<compile_context>
chip_gen: v6e
topology: v6e:2x2x1
jax: 0.10.0
libtpu: 0.0.40
codegen_flags: <defaults>
</compile_context>

<pallas_src>
import jax
import jax.numpy as jnp
from jax.experimental import pallas as pl
from jax.experimental.pallas import tpu as pltpu


def se_fused_kernel(v_ref, w1t_ref, b1_ref, w2_ref, b2_ref, x_ref, o_ref):
    # v_ref:   (C, 1)      squeeze input vector (x49), column layout
    # w1t_ref: (C, C_mid)  conv2d16 weight, transposed to (in, out)
    # b1_ref:  (1, C_mid)  conv2d16 bias, row layout
    # w2_ref:  (C, C_mid)  conv2d17 weight (out, in)
    # b2_ref:  (C, 1)      conv2d17 bias, column layout
    # x_ref:   (C, HW)     x48, lane-dense
    # o_ref:   (C, HW)

    # ---- squeeze: 120 -> 32 (matvec via broadcast-mul + sublane reduce) ----
    h = jnp.sum(w1t_ref[...] * v_ref[...], axis=0, keepdims=True)   # (1, C_mid)
    h = jnp.maximum(h + b1_ref[...], 0.0)                           # ReLU

    # ---- excitation weights: 32 -> 120 (matvec via lane reduce) -> (C, 1) --
    s = jnp.sum(w2_ref[...] * h, axis=1, keepdims=True) + b2_ref[...]  # (C, 1)
    s = jnp.clip(s * (1.0 / 6.0) + 0.5, 0.0, 1.0)                      # hardsigmoid

    # ---- per-channel scale of the main activation ----
    o_ref[...] = x_ref[...] * s


def se_block(x49_nchw, x48_nchw, w1_oihw, b1, w2_oihw, b2):
    N, C, H, W = x48_nchw.shape
    assert N == 1
    HW = H * W
    C_mid = w1_oihw.shape[0]

    # Free / tiny layout prep outside the kernel.
    v_col = x49_nchw.reshape(C, 1)                      # (120, 1)
    w1t = w1_oihw.reshape(C_mid, C).T                   # (120, 32)
    b1_row = b1.reshape(1, C_mid)                       # (1, 32)
    w2 = w2_oihw.reshape(C, C_mid)                      # (120, 32)
    b2_col = b2.reshape(C, 1)                           # (120, 1)
    x_flat = x48_nchw.reshape(C, HW)                    # (120, 784), free reshape

    out_flat = pl.pallas_call(
        se_fused_kernel,
        out_shape=jax.ShapeDtypeStruct((C, HW), x48_nchw.dtype),
        grid=(1,),
        in_specs=[
            pl.BlockSpec((C, 1), lambda i: (0, 0)),
            pl.BlockSpec((C, C_mid), lambda i: (0, 0)),
            pl.BlockSpec((1, C_mid), lambda i: (0, 0)),
            pl.BlockSpec((C, C_mid), lambda i: (0, 0)),
            pl.BlockSpec((C, 1), lambda i: (0, 0)),
            pl.BlockSpec((C, HW), lambda i: (0, 0)),
        ],
        out_specs=pl.BlockSpec((C, HW), lambda i: (0, 0)),
        compiler_params=pltpu.CompilerParams(
            dimension_semantics=("arbitrary",)),
        cost_estimate=pl.CostEstimate(
            flops=4 * C * C_mid + C * HW,
            transcendentals=0,
            bytes_accessed=(2 * C * HW + 2 * C * C_mid + C_mid + 2 * C) * 4),
    )(v_col, w1t, b1_row, w2, b2_col, x_flat)

    return out_flat.reshape(N, C, H, W)


def reference(x49_nchw, x48_nchw, w1_oihw, b1, w2_oihw, b2):
    """Pure-JAX reference of the PyTorch forward."""
    v = x49_nchw.reshape(1, -1)                                   # (1, 120)
    w1 = w1_oihw.reshape(w1_oihw.shape[0], w1_oihw.shape[1])      # (32, 120)
    w2 = w2_oihw.reshape(w2_oihw.shape[0], w2_oihw.shape[1])      # (120, 32)
    h = jnp.maximum(v @ w1.T + b1, 0.0)
    s = h @ w2.T + b2
    s = jnp.clip(s / 6.0 + 0.5, 0.0, 1.0)                         # hardsigmoid
    s = s.reshape(1, -1, 1, 1)
    return s * x48_nchw


if __name__ == "__main__":
    key = jax.random.PRNGKey(0)
    k1, k2, k3, k4, k5, k6 = jax.random.split(key, 6)

    C_in, C_mid = 120, 32
    H = W = 28

    # activations (shapes implied by the module)
    x48 = jax.random.normal(k1, (1, C_in, H, W), dtype=jnp.float32)
    x49 = jax.random.normal(k2, (1, C_in, 1, 1), dtype=jnp.float32)

    # deterministic synthetic parameters (Conv2d 1x1 weight layout: OIHW)
    w1 = jax.random.normal(k3, (C_mid, C_in, 1, 1), dtype=jnp.float32) * 0.1
    b1 = jax.random.normal(k4, (C_mid,), dtype=jnp.float32) * 0.1
    w2 = jax.random.normal(k5, (C_in, C_mid, 1, 1), dtype=jnp.float32) * 0.1
    b2 = jax.random.normal(k6, (C_in,), dtype=jnp.float32) * 0.1

    se_block_jit = jax.jit(se_block)
    out = se_block_jit(x49, x48, w1, b1, w2, b2)
    out = jax.block_until_ready(out)

    ref = reference(x49, x48, w1, b1, w2, b2)
    assert out.shape == (1, C_in, H, W), out.shape
    assert jnp.allclose(out, ref, atol=1e-5, rtol=1e-5), "mismatch vs reference"

    print("KERNEL_OK")
</pallas_src>

<mosaic_0001>
module attributes {stable_mosaic.version = 11 : i64} {
  func.func @se_fused_kernel(%arg0: i32, %arg1: memref<120x1xf32, #tpu.memory_space<vmem>>, %arg2: memref<120x32xf32, #tpu.memory_space<vmem>>, %arg3: memref<1x32xf32, #tpu.memory_space<vmem>>, %arg4: memref<120x32xf32, #tpu.memory_space<vmem>>, %arg5: memref<120x1xf32, #tpu.memory_space<vmem>>, %arg6: memref<120x784xf32, #tpu.memory_space<vmem>>, %arg7: memref<120x784xf32, #tpu.memory_space<vmem>>) attributes {dimension_semantics = [#tpu.dimension_semantics<arbitrary>], iteration_bounds = array<i64: 1>, scalar_prefetch = 0 : i64, scratch_operands = 0 : i64, tpu.core_type = #tpu.core_type<tc>, window_params = [{pipeline_mode = #tpu.pipeline_mode<synchronous>, transform_indices = @transform_0, window_bounds = array<i64: 120, 1>}, {pipeline_mode = #tpu.pipeline_mode<synchronous>, transform_indices = @transform_1, window_bounds = array<i64: 120, 32>}, {pipeline_mode = #tpu.pipeline_mode<synchronous>, transform_indices = @transform_2, window_bounds = array<i64: 1, 32>}, {pipeline_mode = #tpu.pipeline_mode<synchronous>, transform_indices = @transform_3, window_bounds = array<i64: 120, 32>}, {pipeline_mode = #tpu.pipeline_mode<synchronous>, transform_indices = @transform_4, window_bounds = array<i64: 120, 1>}, {pipeline_mode = #tpu.pipeline_mode<synchronous>, transform_indices = @transform_5, window_bounds = array<i64: 120, 784>}, {pipeline_mode = #tpu.pipeline_mode<synchronous>, transform_indices = @transform_6, window_bounds = array<i64: 120, 784>}]} {
    %c0 = arith.constant 0 : index
    %c0_0 = arith.constant 0 : index
    %0 = vector.load %arg2[%c0, %c0_0] : memref<120x32xf32, #tpu.memory_space<vmem>>, vector<120x32xf32>
    %c0_1 = arith.constant 0 : index
    %c0_2 = arith.constant 0 : index
    %1 = vector.load %arg1[%c0_1, %c0_2] : memref<120x1xf32, #tpu.memory_space<vmem>>, vector<120x1xf32>
    %2 = vector.broadcast %1 : vector<120x1xf32> to vector<120x32xf32>
    %3 = arith.mulf %0, %2 : vector<120x32xf32>
    %cst = arith.constant dense<0.000000e+00> : vector<32xf32>
    %4 = vector.multi_reduction <add>, %3, %cst [0] : vector<120x32xf32> to vector<32xf32>
    %5 = vector.shape_cast %4 : vector<32xf32> to vector<1x32xf32>
    %c0_3 = arith.constant 0 : index
    %c0_4 = arith.constant 0 : index
    %6 = vector.load %arg3[%c0_3, %c0_4] : memref<1x32xf32, #tpu.memory_space<vmem>>, vector<1x32xf32>
    %7 = arith.addf %5, %6 : vector<1x32xf32>
    %cst_5 = arith.constant 0.000000e+00 : f32
    %8 = vector.broadcast %cst_5 : f32 to vector<1x32xf32>
    %9 = arith.maximumf %7, %8 : vector<1x32xf32>
    %c0_6 = arith.constant 0 : index
    %c0_7 = arith.constant 0 : index
    %10 = vector.load %arg4[%c0_6, %c0_7] : memref<120x32xf32, #tpu.memory_space<vmem>>, vector<120x32xf32>
    %11 = vector.broadcast %9 : vector<1x32xf32> to vector<120x32xf32>
    %12 = arith.mulf %10, %11 : vector<120x32xf32>
    %cst_8 = arith.constant dense<0.000000e+00> : vector<120xf32>
    %13 = vector.multi_reduction <add>, %12, %cst_8 [1] : vector<120x32xf32> to vector<120xf32>
    %14 = vector.shape_cast %13 : vector<120xf32> to vector<120x1xf32>
    %c0_9 = arith.constant 0 : index
    %c0_10 = arith.constant 0 : index
    %15 = vector.load %arg5[%c0_9, %c0_10] : memref<120x1xf32, #tpu.memory_space<vmem>>, vector<120x1xf32>
    %16 = arith.addf %14, %15 : vector<120x1xf32>
    %cst_11 = arith.constant 0.166666672 : f32
    %17 = vector.broadcast %cst_11 : f32 to vector<120x1xf32>
    %18 = arith.mulf %16, %17 : vector<120x1xf32>
    %cst_12 = arith.constant 5.000000e-01 : f32
    %19 = vector.broadcast %cst_12 : f32 to vector<120x1xf32>
    %20 = arith.addf %18, %19 : vector<120x1xf32>
    %cst_13 = arith.constant 0.000000e+00 : f32
    %cst_14 = arith.constant 1.000000e+00 : f32
    %21 = vector.broadcast %cst_13 : f32 to vector<120x1xf32>
    %22 = arith.maximumf %21, %20 : vector<120x1xf32>
    %23 = vector.broadcast %cst_14 : f32 to vector<120x1xf32>
    %24 = arith.minimumf %23, %22 : vector<120x1xf32>
    %c0_15 = arith.constant 0 : index
    %c0_16 = arith.constant 0 : index
    %25 = vector.load %arg6[%c0_15, %c0_16] : memref<120x784xf32, #tpu.memory_space<vmem>>, vector<120x784xf32>
    %26 = vector.broadcast %24 : vector<120x1xf32> to vector<120x784xf32>
    %27 = arith.mulf %25, %26 : vector<120x784xf32>
    %c0_17 = arith.constant 0 : index
    %c0_18 = arith.constant 0 : index
    %28 = vector.load %arg7[%c0_17, %c0_18] : memref<120x784xf32, #tpu.memory_space<vmem>>, vector<120x784xf32>
    tpu.vector_store %arg7[%c0_17, %c0_18], %27 {strides = array<i32>} : memref<120x784xf32, #tpu.memory_space<vmem>>, vector<120x784xf32>,
    return
  }
  func.func @transform_0(%arg0: i32) -> (i32, i32) {
    %c0_i32 = arith.constant 0 : i32
    %c0_i32_0 = arith.constant 0 : i32
    %c0_i32_1 = arith.constant 0 : i32
    return %c0_i32, %c0_i32_0 : i32, i32
  }
  func.func @transform_1(%arg0: i32) -> (i32, i32) {
    %c0_i32 = arith.constant 0 : i32
    %c0_i32_0 = arith.constant 0 : i32
    %c0_i32_1 = arith.constant 0 : i32
    return %c0_i32, %c0_i32_0 : i32, i32
  }
  func.func @transform_2(%arg0: i32) -> (i32, i32) {
    %c0_i32 = arith.constant 0 : i32
    %c0_i32_0 = arith.constant 0 : i32
    %c0_i32_1 = arith.constant 0 : i32
    return %c0_i32, %c0_i32_0 : i32, i32
  }
  func.func @transform_3(%arg0: i32) -> (i32, i32) {
    %c0_i32 = arith.constant 0 : i32
    %c0_i32_0 = arith.constant 0 : i32
    %c0_i32_1 = arith.constant 0 : i32
    return %c0_i32, %c0_i32_0 : i32, i32
  }
  func.func @transform_4(%arg0: i32) -> (i32, i32) {
    %c0_i32 = arith.constant 0 : i32
    %c0_i32_0 = arith.constant 0 : i32
    %c0_i32_1 = arith.constant 0 : i32
    return %c0_i32, %c0_i32_0 : i32, i32
  }
  func.func @transform_5(%arg0: i32) -> (i32, i32) {
    %c0_i32 = arith.constant 0 : i32
    %c0_i32_0 = arith.constant 0 : i32
    %c0_i32_1 = arith.constant 0 : i32
    return %c0_i32, %c0_i32_0 : i32, i32
  }
  func.func @transform_6(%arg0: i32) -> (i32, i32) {
    %c0_i32 = arith.constant 0 : i32
    %c0_i32_0 = arith.constant 0 : i32
    %c0_i32_1 = arith.constant 0 : i32
    return %c0_i32, %c0_i32_0 : i32, i32
  }
}

</mosaic_0001>

<bundles_post_ra>
// kernel: se_block.1
= control target key start
LH: loop header
LB: loop body
LE: loop exit
PB: predicated region body
PF: predicated region fallthrough
CT: control target
= control target key end

     0   :  { %v749_v0 = vmov 0   ;;  %vm143_vm0 = vcmask 261120   ;;  %vm642_vm1 = vcmask 130048   ;;  %s1643_s0 = inlined_call_operand.vmem [shape: f32[120,1], index: 0, kind: input, shape index: {}]   ;;  %s1644_s1 = inlined_call_operand.vmem [shape: f32[120,32], index: 1, kind: input, shape index: {}]   ;;  %s1645_s2 = inlined_call_operand.vmem [shape: f32[1,32], index: 2, kind: input, shape index: {}]   ;;  %s1646_s3 = inlined_call_operand.vmem [shape: f32[120,32], index: 3, kind: input, shape index: {}]   ;;  %s1647_s4 = inlined_call_operand.vmem [shape: f32[120,1], index: 4, kind: input, shape index: {}]   ;;  %s1648_s5 = inlined_call_operand.vmem [shape: f32[120,784], index: 5, kind: input, shape index: {}]   ;;  %s1649_s6 = inlined_call_operand.vmem [shape: f32[120,784], index: 6, kind: output, shape index: {}]  }
   0x1   :  { %748 = vset.pattern.permute.xlu1 %v749_v0  ;;  %747 = vset.pattern.permute.xlu0 %v749_v0  ;;  %v40_v1 = vld [vmem:[%s1643_s0 + $0x10] sm:$0xff]  ;;  %v38_v2 = vld [vmem:[%s1643_s0] sm:$0xff]  ;;  %v41_v3 = vld [vmem:[%s1643_s0 + $0x18] sm:$0xff] }
   0x2   :  { %65 = vperm.xlu1 %748, %v40_v1   ;;  %55 = vperm.xlu0 %747, %v38_v2   ;;  %v39_v4 = vld [vmem:[%s1643_s0 + $0x8] sm:$0xff]  ;;  %v42_v6 = vld [vmem:[%s1643_s0 + $0x20] sm:$0xff]  ;;  %v45_v7 = vld [vmem:[%s1643_s0 + $0x38] sm:$0xff] }
   0x3   :  { %v43_v5 = vld [vmem:[%s1643_s0 + $0x28] sm:$0xff]  ;;  %v44_v8 = vld [vmem:[%s1643_s0 + $0x30] sm:$0xff]  ;;  %v46_v10 = vld [vmem:[%s1643_s0 + $0x40] sm:$0xff] }
   0x4   :  { %v47_v9 = vld [vmem:[%s1643_s0 + $0x48] sm:$0xff]  ;;  %v49_v11 = vld [vmem:[%s1643_s0 + $0x58] sm:$0xff]  ;;  %v48_v12 = vld [vmem:[%s1643_s0 + $0x50] sm:$0xff] }
   0x5   :  { %v51_v13 = vld [vmem:[%s1643_s0 + $0x68] sm:$0xff]  ;;  %v50_v14 = vld [vmem:[%s1643_s0 + $0x60] sm:$0xff]  ;;  %v52_v15 = vld [vmem:[%s1643_s0 + $0x70] sm:$0xff] }
   0x6   :  { %70 = vperm.xlu1 %748, %v41_v3   ;;  %60 = vperm.xlu0 %747, %v39_v4   ;;  %v23_v17 = vld [vmem:[%s1644_s1] sm:$0xff]  ;;  %v25_v19 = vld [vmem:[%s1644_s1 + $0x10] sm:$0xff]  ;;  %v24_v20 = vld [vmem:[%s1644_s1 + $0x8] sm:$0xff] }
   0x7   :  { %v26_v22 = vld [vmem:[%s1644_s1 + $0x18] sm:$0xff]  ;;  %v27_v27 = vld [vmem:[%s1644_s1 + $0x20] sm:$0xff]  ;;  %v28_v32 = vld [vmem:[%s1644_s1 + $0x28] sm:$0xff] }
   0x8   :  { %v29_v38 = vld [vmem:[%s1644_s1 + $0x30] sm:$0xff]  ;;  %v30_v42 = vld [vmem:[%s1644_s1 + $0x38] sm:$0xff]  ;;  %v31_v48 = vld [vmem:[%s1644_s1 + $0x40] sm:$0xff] }
   0x9   :  { %v32_v52 = vld [vmem:[%s1644_s1 + $0x48] sm:$0xff]  ;;  %v33_v58 = vld [vmem:[%s1644_s1 + $0x50] sm:$0xff]  ;;  %v34_v62 = vld [vmem:[%s1644_s1 + $0x58] sm:$0xff] }
   0xa   :  { %80 = vperm.xlu1 %748, %v43_v5   ;;  %75 = vperm.xlu0 %747, %v42_v6   ;;  %v35_v4 = vld [vmem:[%s1644_s1 + $0x60] sm:$0xff] }
   0xe   :  { %90 = vperm.xlu1 %748, %v45_v7   ;;  %85 = vperm.xlu0 %747, %v44_v8   ;;  %v36_v8 = vld [vmem:[%s1644_s1 + $0x68] sm:$0xff] }
  0x12   :  { %100 = vperm.xlu1 %748, %v47_v9   ;;  %95 = vperm.xlu0 %747, %v46_v10  }
  0x16   :  { %110 = vperm.xlu1 %748, %v49_v11   ;;  %105 = vperm.xlu0 %747, %v48_v12  }
  0x1a   :  { %120 = vperm.xlu1 %748, %v51_v13   ;;  %115 = vperm.xlu0 %747, %v50_v14   ;;  %v37_v14 = vld [vmem:[%s1644_s1 + $0x70] sm:$0xff] }
  0x1e   :  { %125 = vperm.xlu0 %747, %v52_v15  }
  0x7d   :  { %v66_v16 = vpop.permute.xlu1 %65  ;;  %v56_v18 = vpop.permute.xlu0 %55 }
  0x7e   :  { %v128_v21 = vmul.f32 %v56_v18, %v23_v17  ;;  %v130_v25 = vmul.f32 %v66_v16, %v25_v19 }
  0x80   :  { %v144_v28 = vsel %vm143_vm0, %v128_v21, 0.0  ;;  %v147_v35 = vsel %vm143_vm0, %v130_v25, 0.0 }
  0x81   :  { %v71_v23 = vpop.permute.xlu1 %70  ;;  %v61_v24 = vpop.permute.xlu0 %60 }
  0x82   :  { %v129_v26 = vmul.f32 %v61_v24, %v24_v20  ;;  %v131_v29 = vmul.f32 %v71_v23, %v26_v22 }
  0x84   :  { %v145_v30 = vsel %vm143_vm0, %v129_v26, 0.0  ;;  %v149_v39 = vsel %vm143_vm0, %v131_v29, 0.0 }
  0x85   :  { %v146_v31 = vadd.f32 %v145_v30, %v144_v28  ;;  %v81_v33 = vpop.permute.xlu1 %80  ;;  %v76_v34 = vpop.permute.xlu0 %75  ;;  %v197_v28 = vlaneseq }
  0x86   :  { %v132_v36 = vmul.f32 %v76_v34, %v27_v27  ;;  %v133_v40 = vmul.f32 %v81_v33, %v28_v32  ;;  %v179_v33 = vld [vmem:[%s1645_s2] sm:$0x1] }
  0x87   :  { %v148_v37 = vadd.f32 %v147_v35, %v146_v31  ;;  %v198_v31 = vshrl.u32 %v197_v28, 7 }
  0x88   :  { %v151_v45 = vsel %vm143_vm0, %v132_v36, 0.0  ;;  %v153_v49 = vsel %vm143_vm0, %v133_v40, 0.0 }
  0x89   :  { %v150_v41 = vadd.f32 %v149_v39, %v148_v37  ;;  %v91_v43 = vpop.permute.xlu1 %90  ;;  %v86_v44 = vpop.permute.xlu0 %85  ;;  %v199_v35 = vsub.s32 0, %v198_v31  ;;  %v182_v39 = vld [vmem:[%s1646_s3] sm:$0xff] }
  0x8a   :  { %v134_v46 = vmul.f32 %v86_v44, %v29_v38  ;;  %v135_v50 = vmul.f32 %v91_v43, %v30_v42  ;;  %v183_v38 = vld [vmem:[%s1646_s3 + $0x8] sm:$0xff]  ;;  %v185_v42 = vld [vmem:[%s1646_s3 + $0x18] sm:$0xff] }
  0x8b   :  { %v152_v47 = vadd.f32 %v151_v45, %v150_v41  ;;  %v184_v41 = vld [vmem:[%s1646_s3 + $0x10] sm:$0xff] }
  0x8c   :  { %v155_v55 = vsel %vm143_vm0, %v134_v46, 0.0  ;;  %v157_v59 = vsel %vm143_vm0, %v135_v50, 0.0  ;;  %v187_v50 = vld [vmem:[%s1646_s3 + $0x28] sm:$0xff] }
  0x8d   :  { %v154_v51 = vadd.f32 %v153_v49, %v152_v47  ;;  %v101_v53 = vpop.permute.xlu1 %100  ;;  %v96_v54 = vpop.permute.xlu0 %95  ;;  %v186_v49 = vld [vmem:[%s1646_s3 + $0x20] sm:$0xff] }
  0x8e   :  { %v136_v56 = vmul.f32 %v96_v54, %v31_v48  ;;  %v137_v60 = vmul.f32 %v101_v53, %v32_v52 }
  0x8f   :  { %v156_v57 = vadd.f32 %v155_v55, %v154_v51  ;;  %v188_v55 = vld [vmem:[%s1646_s3 + $0x30] sm:$0xff] }
  0x90   :  { %v159_v1 = vsel %vm143_vm0, %v136_v56, 0.0  ;;  %v161_v5 = vsel %vm143_vm0, %v137_v60, 0.0  ;;  %v189_v56 = vld [vmem:[%s1646_s3 + $0x38] sm:$0xff] }
  0x91   :  { %v158_v61 = vadd.f32 %v157_v59, %v156_v57  ;;  %v111_v63 = vpop.permute.xlu1 %110  ;;  %v106_v0 = vpop.permute.xlu0 %105 }
  0x92   :  { %v138_v2 = vmul.f32 %v106_v0, %v33_v58  ;;  %v139_v6 = vmul.f32 %v111_v63, %v34_v62  ;;  %v191_v62 = vld [vmem:[%s1646_s3 + $0x48] sm:$0xff] }
  0x93   :  { %v160_v3 = vadd.f32 %v159_v1, %v158_v61  ;;  %v190_v61 = vld [vmem:[%s1646_s3 + $0x40] sm:$0xff] }
  0x94   :  { %v163_v11 = vsel %vm143_vm0, %v138_v2, 0.0  ;;  %v165_v15 = vsel %vm143_vm0, %v139_v6, 0.0 }
  0x95   :  { %v162_v7 = vadd.f32 %v161_v5, %v160_v3  ;;  %v121_v9 = vpop.permute.xlu1 %120  ;;  %v116_v10 = vpop.permute.xlu0 %115  ;;  %v192_v3 = vld [vmem:[%s1646_s3 + $0x50] sm:$0xff] }
  0x96   :  { %v140_v12 = vmul.f32 %v116_v10, %v35_v4  ;;  %v141_v16 = vmul.f32 %v121_v9, %v36_v8  ;;  %v193_v4 = vld [vmem:[%s1646_s3 + $0x58] sm:$0xff]  ;;  %v194_v9 = vld [vmem:[%s1646_s3 + $0x60] sm:$0xff]  ;;  %v195_v10 = vld [vmem:[%s1646_s3 + $0x68] sm:$0xff] }
  0x97   :  { %v164_v13 = vadd.f32 %v163_v11, %v162_v7 }
  0x98   :  { %v167_v19 = vsel %vm143_vm0, %v140_v12, 0.0  ;;  %v169_v22 = vsel %vm143_vm0, %v141_v16, 0.0 }
  0x99   :  { %v166_v17 = vadd.f32 %v165_v15, %v164_v13  ;;  %v126_v18 = vpop.permute.xlu0 %125  ;;  %v196_v15 = vld [vmem:[%s1646_s3 + $0x70] sm:$0xff] }
  0x9a   :  { %v142_v20 = vmul.f32 %v126_v18, %v37_v14 }
  0x9b   :  { %v168_v21 = vadd.f32 %v167_v19, %v166_v17 }
  0x9c   :  { %v171_v24 = vsel %vm143_vm0, %v142_v20, 0.0  ;;  %v262_v20 = vld [vmem:[%s1647_s4 + $0x8] sm:$0xff] }
  0x9d   :  { %v170_v23 = vadd.f32 %v169_v22, %v168_v21  ;;  %v261_v21 = vld [vmem:[%s1647_s4] sm:$0xff] }
  0x9f   :  { %v172_v25 = vadd.f32 %v171_v24, %v170_v23 }
  0xa1   :  { %v173_v26 = vrot.slane %v172_v25, 4 }
  0xa3   :  { %v174_v27 = vadd.f32 %v173_v26, %v172_v25  ;;  %v263_v26 = vld [vmem:[%s1647_s4 + $0x10] sm:$0xff] }
  0xa5   :  { %v175_v29 = vrot.slane %v174_v27, 2 }
  0xa7   :  { %v176_v30 = vadd.f32 %v175_v29, %v174_v27  ;;  %v264_v27 = vld [vmem:[%s1647_s4 + $0x18] sm:$0xff] }
  0xa9   :  { %v177_v32 = vrot.slane %v176_v30, 1 }
  0xab   :  { %v178_v34 = vadd.f32 %v177_v32, %v176_v30 }
  0xad   :  { %v180_v36 = vadd.f32 %v179_v33, %v178_v34 }
  0xaf   :  { %v181_v37 = vmax.f32 %v180_v36, 0.0  ;;  %v265_v36 = vld [vmem:[%s1647_s4 + $0x20] sm:$0xff] }
  0xb1   :  { %v200_v40 = vrot.slane %v181_v37, %v199_v35  ;;  %v266_v37 = vld [vmem:[%s1647_s4 + $0x28] sm:$0xff] }
  0xb3   :  { %v202_v43 = vmul.f32 %v200_v40, %v183_v38  ;;  %v201_v44 = vmul.f32 %v200_v40, %v182_v39  ;;  %v203_v47 = vmul.f32 %v200_v40, %v184_v41  ;;  %v204_v48 = vmul.f32 %v200_v40, %v185_v42 }
  0xb4   :  { %v205_v53 = vmul.f32 %v200_v40, %v186_v49  ;;  %v206_v54 = vmul.f32 %v200_v40, %v187_v50  ;;  %v207_v59 = vmul.f32 %v200_v40, %v188_v55  ;;  %v208_v60 = vmul.f32 %v200_v40, %v189_v56  ;;  %v267_v50 = vld [vmem:[%s1647_s4 + $0x30] sm:$0xff] }
  0xb5   :  { %v219_v45 = vsel %vm143_vm0, %v202_v43, 0.0  ;;  %v216_v46 = vsel %vm143_vm0, %v201_v44, 0.0  ;;  %v222_v51 = vsel %vm143_vm0, %v203_v47, 0.0  ;;  %v225_v52 = vsel %vm143_vm0, %v204_v48, 0.0 }
  0xb6   :  { %220 = vadd.xlane.f32.xlu0 %v219_v45  ;;  %217 = vadd.xlane.f32.xlu1 %v216_v46  ;;  %v228_v57 = vsel %vm143_vm0, %v205_v53, 0.0  ;;  %v231_v58 = vsel %vm143_vm0, %v206_v54, 0.0  ;;  %v234_v63 = vsel %vm143_vm0, %v207_v59, 0.0  ;;  %v237_v0 = vsel %vm143_vm0, %v208_v60, 0.0 }
  0xb7   :  { %v209_v1 = vmul.f32 %v200_v40, %v190_v61  ;;  %v210_v2 = vmul.f32 %v200_v40, %v191_v62  ;;  %v211_v7 = vmul.f32 %v200_v40, %v192_v3  ;;  %v212_v8 = vmul.f32 %v200_v40, %v193_v4 }
  0xb8   :  { %v213_v13 = vmul.f32 %v200_v40, %v194_v9  ;;  %v214_v14 = vmul.f32 %v200_v40, %v195_v10  ;;  %v215_v18 = vmul.f32 %v200_v40, %v196_v15 }
  0xb9   :  { %v240_v5 = vsel %vm143_vm0, %v209_v1, 0.0  ;;  %v243_v6 = vsel %vm143_vm0, %v210_v2, 0.0  ;;  %v246_v11 = vsel %vm143_vm0, %v211_v7, 0.0  ;;  %v249_v12 = vsel %vm143_vm0, %v212_v8, 0.0 }
  0xba   :  { %223 = vadd.xlane.f32.xlu0 %v222_v51  ;;  %226 = vadd.xlane.f32.xlu1 %v225_v52  ;;  %v252_v16 = vsel %vm143_vm0, %v213_v13, 0.0  ;;  %v255_v17 = vsel %vm143_vm0, %v214_v14, 0.0  ;;  %v258_v19 = vsel %vm143_vm0, %v215_v18, 0.0  ;;  %v268_v51 = vld [vmem:[%s1647_s4 + $0x38] sm:$0xff]  ;;  %v271_v13 = vld [vmem:[%s1647_s4 + $0x50] sm:$0xff] }
  0xbe   :  { %229 = vadd.xlane.f32.xlu0 %v228_v57  ;;  %232 = vadd.xlane.f32.xlu1 %v231_v58 }
  0xc2   :  { %235 = vadd.xlane.f32.xlu0 %v234_v63  ;;  %238 = vadd.xlane.f32.xlu1 %v237_v0  ;;  %v269_v63 = vld [vmem:[%s1647_s4 + $0x40] sm:$0xff]  ;;  %v270_v0 = vld [vmem:[%s1647_s4 + $0x48] sm:$0xff] }
  0xc6   :  { %241 = vadd.xlane.f32.xlu0 %v240_v5  ;;  %244 = vadd.xlane.f32.xlu1 %v243_v6 }
  0xca   :  { %247 = vadd.xlane.f32.xlu0 %v246_v11  ;;  %250 = vadd.xlane.f32.xlu1 %v249_v12 }
  0xce   :  { %253 = vadd.xlane.f32.xlu0 %v252_v16  ;;  %256 = vadd.xlane.f32.xlu1 %v255_v17  ;;  %v272_v17 = vld [vmem:[%s1647_s4 + $0x58] sm:$0xff] }
  0xd2   :  { %259 = vadd.xlane.f32.xlu0 %v258_v19 }
 0x13f   :  { %v221_v22 = vpop.xlane.xlu0 %220  ;;  %v218_v23 = vpop.xlane.xlu1 %217 }
 0x140   :  { %v277_v24 = vadd.f32 %v262_v20, %v221_v22  ;;  %v276_v25 = vadd.f32 %v261_v21, %v218_v23 }
 0x142   :  { %v292_v28 = vmul.f32 0.16666667, %v277_v24  ;;  %v291_v29 = vmul.f32 0.16666667, %v276_v25 }
 0x143   :  { %v224_v30 = vpop.xlane.xlu0 %223  ;;  %v227_v31 = vpop.xlane.xlu1 %226 }
 0x144   :  { %v307_v32 = vadd.f32 0.5, %v292_v28  ;;  %v306_v33 = vadd.f32 0.5, %v291_v29  ;;  %v278_v34 = vadd.f32 %v263_v26, %v224_v30  ;;  %v279_v35 = vadd.f32 %v264_v27, %v227_v31  ;;  %v273_v27 = vld [vmem:[%s1647_s4 + $0x60] sm:$0xff]  ;;  %v274_v28 = vld [vmem:[%s1647_s4 + $0x68] sm:$0xff] }
 0x146   :  { %v322_v38 = vmax.f32 %v307_v32, 0.0  ;;  %v321_v39 = vmax.f32 %v306_v33, 0.0  ;;  %v293_v40 = vmul.f32 0.16666667, %v278_v34  ;;  %v294_v41 = vmul.f32 0.16666667, %v279_v35 }
 0x147   :  { %v230_v42 = vpop.xlane.xlu0 %229  ;;  %v233_v43 = vpop.xlane.xlu1 %232 }
 0x148   :  { %v337_v44 = vmin.f32 %v322_v38, 1.0  ;;  %v336_v45 = vmin.f32 %v321_v39, 1.0  ;;  %v308_v46 = vadd.f32 0.5, %v293_v40  ;;  %v309_v47 = vadd.f32 0.5, %v294_v41  ;;  %v275_v41 = vld [vmem:[%s1647_s4 + $0x70] sm:$0xff] }
 0x149   :  { %v280_v48 = vadd.f32 %v265_v36, %v230_v42  ;;  %v281_v49 = vadd.f32 %v266_v37, %v233_v43 }
 0x14a   :  { %v323_v52 = vmax.f32 %v308_v46, 0.0  ;;  %463 = vperm.xlu0 %747, %v337_v44   ;;  %458 = vperm.xlu1 %748, %v336_v45   ;;  %v324_v53 = vmax.f32 %v309_v47, 0.0 }
 0x14b   :  { %v295_v54 = vmul.f32 0.16666667, %v280_v48  ;;  %v296_v55 = vmul.f32 0.16666667, %v281_v49  ;;  %v236_v56 = vpop.xlane.xlu0 %235  ;;  %v239_v57 = vpop.xlane.xlu1 %238 }
 0x14c   :  { %v338_v58 = vmin.f32 %v323_v52, 1.0  ;;  %v282_v59 = vadd.f32 %v267_v50, %v236_v56  ;;  %v283_v60 = vadd.f32 %v268_v51, %v239_v57  ;;  %v339_v3 = vmin.f32 %v324_v53, 1.0 }
 0x14d   :  { %v310_v61 = vadd.f32 0.5, %v295_v54  ;;  %v311_v62 = vadd.f32 0.5, %v296_v55 }
 0x14e   :  { %v297_v1 = vmul.f32 0.16666667, %v282_v59  ;;  %v298_v2 = vmul.f32 0.16666667, %v283_v60  ;;  %468 = vperm.xlu1 %748, %v338_v58  }
 0x14f   :  { %v325_v4 = vmax.f32 %v310_v61, 0.0  ;;  %v326_v5 = vmax.f32 %v311_v62, 0.0  ;;  %v242_v6 = vpop.xlane.xlu0 %241  ;;  %v245_v7 = vpop.xlane.xlu1 %244  ;;  %v358_v61 = vld [vmem:[%s1648_s5 + $0x38] sm:$0xff]  ;;  %v359_v62 = vld [vmem:[%s1648_s5 + $0x40] sm:$0xff] }
 0x150   :  { %v312_v8 = vadd.f32 0.5, %v297_v1  ;;  %v313_v9 = vadd.f32 0.5, %v298_v2  ;;  %v284_v10 = vadd.f32 %v269_v63, %v242_v6  ;;  %v285_v11 = vadd.f32 %v270_v0, %v245_v7  ;;  %v360_v63 = vld [vmem:[%s1648_s5 + $0x48] sm:$0xff]  ;;  %v361_v0 = vld [vmem:[%s1648_s5 + $0x50] sm:$0xff]  ;;  %v362_v1 = vld [vmem:[%s1648_s5 + $0x58] sm:$0xff] }
 0x151   :  { %v340_v12 = vmin.f32 %v325_v4, 1.0  ;;  %v341_v18 = vmin.f32 %v326_v5, 1.0  ;;  %v363_v2 = vld [vmem:[%s1648_s5 + $0x60] sm:$0xff]  ;;  %v352_v5 = vld [vmem:[%s1648_s5 + $0x8] sm:$0xff]  ;;  %v353_v7 = vld [vmem:[%s1648_s5 + $0x10] sm:$0xff] }
 0x152   :  { %v327_v14 = vmax.f32 %v312_v8, 0.0  ;;  %v299_v15 = vmul.f32 0.16666667, %v284_v10  ;;  %v300_v16 = vmul.f32 0.16666667, %v285_v11  ;;  %473 = vperm.xlu1 %748, %v339_v3   ;;  %v328_v22 = vmax.f32 %v313_v9, 0.0 }
 0x153   :  { %478 = vperm.xlu0 %747, %v340_v12   ;;  %v248_v19 = vpop.xlane.xlu0 %247  ;;  %v251_v20 = vpop.xlane.xlu1 %250  ;;  %v364_v3 = vld [vmem:[%s1648_s5 + $0x68] sm:$0xff]  ;;  %v351_v4 = vld [vmem:[%s1648_s5] sm:$0xff]  ;;  %v354_v8 = vld [vmem:[%s1648_s5 + $0x18] sm:$0xff] }
 0x154   :  { %v342_v21 = vmin.f32 %v327_v14, 1.0  ;;  %v314_v23 = vadd.f32 0.5, %v299_v15  ;;  %v315_v24 = vadd.f32 0.5, %v300_v16  ;;  %v286_v25 = vadd.f32 %v271_v13, %v248_v19  ;;  %v355_v9 = vld [vmem:[%s1648_s5 + $0x20] sm:$0xff]  ;;  %v356_v15 = vld [vmem:[%s1648_s5 + $0x28] sm:$0xff]  ;;  %v357_v16 = vld [vmem:[%s1648_s5 + $0x30] sm:$0xff] }
 0x155   :  { %v287_v26 = vadd.f32 %v272_v17, %v251_v20  ;;  %v343_v35 = vmin.f32 %v328_v22, 1.0  ;;  %v365_v17 = vld [vmem:[%s1648_s5 + $0x70] sm:$0xff]  ;;  %v366_v22 = vld [vmem:[%s1648_s5 + $0x78] sm:$0xff] }
 0x156   :  { %v329_v29 = vmax.f32 %v314_v23, 0.0  ;;  %483 = vperm.xlu1 %748, %v341_v18   ;;  %v330_v30 = vmax.f32 %v315_v24, 0.0  ;;  %v301_v31 = vmul.f32 0.16666667, %v286_v25  ;;  %v367_v23 = vld [vmem:[%s1648_s5 + $0x80] sm:$0xff]  ;;  %v368_v24 = vld [vmem:[%s1648_s5 + $0x88] sm:$0xff] }
 0x157   :  { %v302_v32 = vmul.f32 0.16666667, %v287_v26  ;;  %488 = vperm.xlu0 %747, %v342_v21   ;;  %v254_v33 = vpop.xlane.xlu0 %253  ;;  %v257_v34 = vpop.xlane.xlu1 %256 }
 0x158   :  { %v344_v36 = vmin.f32 %v329_v29, 1.0  ;;  %v288_v37 = vadd.f32 %v273_v27, %v254_v33  ;;  %v289_v38 = vadd.f32 %v274_v28, %v257_v34  ;;  %v316_v39 = vadd.f32 0.5, %v301_v31  ;;  %v369_v29 = vld [vmem:[%s1648_s5 + $0x90] sm:$0xff]  ;;  %v371_v31 = vld [vmem:[%s1648_s5 + $0xa0] sm:$0xff] }
 0x159   :  { %v317_v40 = vadd.f32 0.5, %v302_v32  ;;  %v345_v44 = vmin.f32 %v330_v30, 1.0  ;;  %v370_v30 = vld [vmem:[%s1648_s5 + $0x98] sm:$0xff] }
 0x15a   :  { %v303_v42 = vmul.f32 0.16666667, %v288_v37  ;;  %v304_v43 = vmul.f32 0.16666667, %v289_v38  ;;  %493 = vperm.xlu1 %748, %v343_v35   ;;  %v331_v45 = vmax.f32 %v316_v39, 0.0  ;;  %v379_v39 = vld [vmem:[%s1648_s5 + $0xe0] sm:$0xff] }
 0x15b   :  { %498 = vperm.xlu0 %747, %v344_v36   ;;  %v260_v46 = vpop.xlane.xlu0 %259  ;;  %v332_v47 = vmax.f32 %v317_v40, 0.0  ;;  %v380_v40 = vld [vmem:[%s1648_s5 + $0xe8] sm:$0xff] }
 0x15c   :  { %v318_v48 = vadd.f32 0.5, %v303_v42  ;;  %v319_v49 = vadd.f32 0.5, %v304_v43  ;;  %v290_v50 = vadd.f32 %v275_v41, %v260_v46  ;;  %v346_v51 = vmin.f32 %v331_v45, 1.0  ;;  %v381_v41 = vld [vmem:[%s1648_s5 + $0xf0] sm:$0xff]  ;;  %v382_v42 = vld [vmem:[%s1648_s5 + $0xf8] sm:$0xff]  ;;  %v372_v43 = vld [vmem:[%s1648_s5 + $0xa8] sm:$0xff] }
 0x15d   :  { %v347_v54 = vmin.f32 %v332_v47, 1.0  ;;  %v373_v47 = vld [vmem:[%s1648_s5 + $0xb0] sm:$0xff] }
 0x15e   :  { %v333_v52 = vmax.f32 %v318_v48, 0.0  ;;  %v305_v53 = vmul.f32 0.16666667, %v290_v50  ;;  %503 = vperm.xlu1 %748, %v345_v44   ;;  %v334_v56 = vmax.f32 %v319_v49, 0.0  ;;  %v374_v48 = vld [vmem:[%s1648_s5 + $0xb8] sm:$0xff]  ;;  %v375_v49 = vld [vmem:[%s1648_s5 + $0xc0] sm:$0xff] }
 0x15f   :  { %508 = vperm.xlu0 %747, %v346_v51   ;;  %v383_v50 = vld [vmem:[%s1648_s5 + $0x100] sm:$0xff]  ;;  %v384_v51 = vld [vmem:[%s1648_s5 + $0x108] sm:$0xff] }
 0x160   :  { %v348_v55 = vmin.f32 %v333_v52, 1.0  ;;  %v320_v57 = vadd.f32 0.5, %v305_v53  ;;  %v349_v59 = vmin.f32 %v334_v56, 1.0  ;;  %v385_v52 = vld [vmem:[%s1648_s5 + $0x110] sm:$0xff]  ;;  %v376_v53 = vld [vmem:[%s1648_s5 + $0xc8] sm:$0xff] }
 0x162   :  { %v335_v58 = vmax.f32 %v320_v57, 0.0  ;;  %513 = vperm.xlu1 %748, %v347_v54   ;;  %v377_v54 = vld [vmem:[%s1648_s5 + $0xd0] sm:$0xff] }
 0x163   :  { %518 = vperm.xlu0 %747, %v348_v55   ;;  %v378_v55 = vld [vmem:[%s1648_s5 + $0xd8] sm:$0xff] }
 0x164   :  { %v350_v60 = vmin.f32 %v335_v58, 1.0 }
 0x166   :  { %523 = vperm.xlu1 %748, %v349_v59  }
 0x167   :  { %528 = vperm.xlu0 %747, %v350_v60  }
 0x1c5   :  { %v464_v6 = vpop.permute.xlu0 %463  ;;  %v459_v10 = vpop.permute.xlu1 %458 }
 0x1c6   :  { %v538_v11 = vmul.f32 %v464_v6, %v358_v61  ;;  %v539_v12 = vmul.f32 %v464_v6, %v359_v62  ;;  %v540_v13 = vmul.f32 %v464_v6, %v360_v63  ;;  %v541_v14 = vmul.f32 %v464_v6, %v361_v0  ;;  %v393_v62 = vld [vmem:[%s1648_s5 + $0x150] sm:$0xff]  ;;  %v394_v63 = vld [vmem:[%s1648_s5 + $0x158] sm:$0xff]  ;;  %v395_v0 = vld [vmem:[%s1648_s5 + $0x160] sm:$0xff] }
 0x1c7   :  { %v542_v18 = vmul.f32 %v464_v6, %v362_v1  ;;  %v543_v19 = vmul.f32 %v464_v6, %v363_v2  ;;  %v544_v20 = vmul.f32 %v464_v6, %v364_v3  ;;  %v531_v21 = vmul.f32 %v459_v10, %v351_v4  ;;  %v396_v1 = vld [vmem:[%s1648_s5 + $0x168] sm:$0xff]  ;;  %v386_v2 = vld [vmem:[%s1648_s5 + $0x118] sm:$0xff] }
 0x1c8   :  { %644 = vst [vmem:[%s1649_s6 + $0x38] sm:$0xff] %v538_v11  ;;  %645 = vst [vmem:[%s1649_s6 + $0x40] sm:$0xff] %v539_v12  ;;  %v532_v25 = vmul.f32 %v459_v10, %v352_v5  ;;  %v533_v26 = vmul.f32 %v459_v10, %v353_v7  ;;  %v534_v27 = vmul.f32 %v459_v10, %v354_v8  ;;  %v387_v7 = vld [vmem:[%s1648_s5 + $0x120] sm:$0xff]  ;;  %v388_v8 = vld [vmem:[%s1648_s5 + $0x128] sm:$0xff] }
 0x1c9   :  { %646 = vst [vmem:[%s1649_s6 + $0x48] sm:$0xff] %v540_v13  ;;  %647 = vst [vmem:[%s1649_s6 + $0x50] sm:$0xff] %v541_v14  ;;  %v535_v28 = vmul.f32 %v459_v10, %v355_v9  ;;  %v536_v32 = vmul.f32 %v459_v10, %v356_v15  ;;  %v537_v33 = vmul.f32 %v459_v10, %v357_v16  ;;  %v469_v34 = vpop.permute.xlu1 %468  ;;  %v389_v9 = vld [vmem:[%s1648_s5 + $0x130] sm:$0xff]  ;;  %v398_v15 = vld [vmem:[%s1648_s5 + $0x178] sm:$0xff] }
 0x1ca   :  { %648 = vst [vmem:[%s1649_s6 + $0x58] sm:$0xff] %v542_v18  ;;  %649 = vst [vmem:[%s1649_s6 + $0x60] sm:$0xff] %v543_v19  ;;  %v545_v35 = vmul.f32 %v469_v34, %v365_v17  ;;  %v546_v36 = vmul.f32 %v469_v34, %v366_v22  ;;  %v547_v37 = vmul.f32 %v469_v34, %v367_v23  ;;  %v397_v14 = vld [vmem:[%s1648_s5 + $0x170] sm:$0xff]  ;;  %v399_v16 = vld [vmem:[%s1648_s5 + $0x180] sm:$0xff] }
 0x1cb   :  { %650 = vst.msk [vmem:[%s1649_s6 + $0x68] sm:$0xff] %vm642_vm1, %v544_v20  ;;  %636 = vst [vmem:[%s1649_s6] sm:$0xff] %v531_v21  ;;  %v548_v38 = vmul.f32 %v469_v34, %v368_v24  ;;  %v549_v44 = vmul.f32 %v469_v34, %v369_v29  ;;  %v550_v45 = vmul.f32 %v469_v34, %v370_v30  ;;  %v390_v19 = vld [vmem:[%s1648_s5 + $0x138] sm:$0xff]  ;;  %v391_v20 = vld [vmem:[%s1648_s5 + $0x140] sm:$0xff] }
 0x1cc   :  { %637 = vst [vmem:[%s1649_s6 + $0x8] sm:$0xff] %v532_v25  ;;  %638 = vst [vmem:[%s1649_s6 + $0x10] sm:$0xff] %v533_v26  ;;  %v551_v46 = vmul.f32 %v469_v34, %v371_v31  ;;  %v392_v21 = vld [vmem:[%s1648_s5 + $0x148] sm:$0xff]  ;;  %v409_v30 = vld [vmem:[%s1648_s5 + $0x1d0] sm:$0xff] }
 0x1cd   :  { %639 = vst [vmem:[%s1649_s6 + $0x18] sm:$0xff] %v534_v27  ;;  %640 = vst [vmem:[%s1649_s6 + $0x20] sm:$0xff] %v535_v28  ;;  %v474_v56 = vpop.permute.xlu1 %473  ;;  %v407_v28 = vld [vmem:[%s1648_s5 + $0x1c0] sm:$0xff]  ;;  %v408_v29 = vld [vmem:[%s1648_s5 + $0x1c8] sm:$0xff] }
 0x1ce   :  { %641 = vst [vmem:[%s1649_s6 + $0x28] sm:$0xff] %v536_v32  ;;  %643 = vst.msk [vmem:[%s1649_s6 + $0x30] sm:$0xff] %vm642_vm1, %v537_v33  ;;  %v479_v57 = vpop.permute.xlu0 %478  ;;  %v552_v58 = vmul.f32 %v474_v56, %v372_v43  ;;  %v553_v59 = vmul.f32 %v474_v56, %v373_v47  ;;  %v554_v60 = vmul.f32 %v474_v56, %v374_v48  ;;  %v410_v31 = vld [vmem:[%s1648_s5 + $0x1d8] sm:$0xff]  ;;  %v400_v32 = vld [vmem:[%s1648_s5 + $0x188] sm:$0xff] }
 0x1cf   :  { %651 = vst [vmem:[%s1649_s6 + $0x70] sm:$0xff] %v545_v35  ;;  %652 = vst [vmem:[%s1649_s6 + $0x78] sm:$0xff] %v546_v36  ;;  %v555_v61 = vmul.f32 %v474_v56, %v375_v49  ;;  %v559_v3 = vmul.f32 %v479_v57, %v379_v39  ;;  %v560_v4 = vmul.f32 %v479_v57, %v380_v40  ;;  %v403_v39 = vld [vmem:[%s1648_s5 + $0x1a0] sm:$0xff]  ;;  %v404_v49 = vld [vmem:[%s1648_s5 + $0x1a8] sm:$0xff] }
 0x1d0   :  { %653 = vst [vmem:[%s1649_s6 + $0x80] sm:$0xff] %v547_v37  ;;  %654 = vst [vmem:[%s1649_s6 + $0x88] sm:$0xff] %v548_v38  ;;  %v561_v5 = vmul.f32 %v479_v57, %v381_v41  ;;  %v562_v6 = vmul.f32 %v479_v57, %v382_v42  ;;  %v563_v10 = vmul.f32 %v479_v57, %v383_v50  ;;  %v401_v37 = vld [vmem:[%s1648_s5 + $0x190] sm:$0xff]  ;;  %v402_v38 = vld [vmem:[%s1648_s5 + $0x198] sm:$0xff] }
 0x1d1   :  { %655 = vst [vmem:[%s1649_s6 + $0x90] sm:$0xff] %v549_v44  ;;  %656 = vst [vmem:[%s1649_s6 + $0x98] sm:$0xff] %v550_v45  ;;  %v564_v11 = vmul.f32 %v479_v57, %v384_v51  ;;  %v565_v12 = vmul.f32 %v479_v57, %v385_v52  ;;  %v556_v13 = vmul.f32 %v474_v56, %v376_v53  ;;  %v484_v22 = vpop.permute.xlu1 %483  ;;  %v411_v44 = vld [vmem:[%s1648_s5 + $0x1e0] sm:$0xff]  ;;  %v412_v45 = vld [vmem:[%s1648_s5 + $0x1e8] sm:$0xff] }
 0x1d2   :  { %657 = vst.msk [vmem:[%s1649_s6 + $0xa0] sm:$0xff] %vm642_vm1, %v551_v46  ;;  %658 = vst [vmem:[%s1649_s6 + $0xa8] sm:$0xff] %v552_v58  ;;  %v557_v17 = vmul.f32 %v474_v56, %v377_v54  ;;  %v558_v18 = vmul.f32 %v474_v56, %v378_v55  ;;  %v489_v23 = vpop.permute.xlu0 %488  ;;  %v566_v24 = vmul.f32 %v484_v22, %v386_v2  ;;  %v413_v46 = vld [vmem:[%s1648_s5 + $0x1f0] sm:$0xff]  ;;  %v406_v51 = vld [vmem:[%s1648_s5 + $0x1b8] sm:$0xff] }
 0x1d3   :  { %659 = vst [vmem:[%s1649_s6 + $0xb0] sm:$0xff] %v553_v59  ;;  %660 = vst [vmem:[%s1649_s6 + $0xb8] sm:$0xff] %v554_v60  ;;  %v567_v25 = vmul.f32 %v484_v22, %v387_v7  ;;  %v568_v26 = vmul.f32 %v484_v22, %v388_v8  ;;  %v569_v27 = vmul.f32 %v484_v22, %v389_v9  ;;  %v405_v50 = vld [vmem:[%s1648_s5 + $0x1b0] sm:$0xff]  ;;  %v422_v59 = vld [vmem:[%s1648_s5 + $0x238] sm:$0xff] }
 0x1d4   :  { %661 = vst [vmem:[%s1649_s6 + $0xc0] sm:$0xff] %v555_v61  ;;  %665 = vst [vmem:[%s1649_s6 + $0xe0] sm:$0xff] %v559_v3  ;;  %v573_v33 = vmul.f32 %v489_v23, %v393_v62  ;;  %v574_v34 = vmul.f32 %v489_v23, %v394_v63  ;;  %v575_v35 = vmul.f32 %v489_v23, %v395_v0  ;;  %v421_v58 = vld [vmem:[%s1648_s5 + $0x230] sm:$0xff]  ;;  %v423_v60 = vld [vmem:[%s1648_s5 + $0x240] sm:$0xff] }
 0x1d5   :  { %666 = vst [vmem:[%s1649_s6 + $0xe8] sm:$0xff] %v560_v4  ;;  %667 = vst [vmem:[%s1649_s6 + $0xf0] sm:$0xff] %v561_v5  ;;  %v576_v36 = vmul.f32 %v489_v23, %v396_v1  ;;  %v577_v40 = vmul.f32 %v489_v23, %v397_v14  ;;  %v578_v41 = vmul.f32 %v489_v23, %v398_v15  ;;  %v494_v52 = vpop.permute.xlu1 %493  ;;  %v424_v61 = vld [vmem:[%s1648_s5 + $0x248] sm:$0xff]  ;;  %v414_v62 = vld [vmem:[%s1648_s5 + $0x1f8] sm:$0xff] }
 0x1d6   :  { %668 = vst [vmem:[%s1649_s6 + $0xf8] sm:$0xff] %v562_v6  ;;  %669 = vst [vmem:[%s1649_s6 + $0x100] sm:$0xff] %v563_v10  ;;  %v579_v42 = vmul.f32 %v489_v23, %v399_v16  ;;  %v570_v43 = vmul.f32 %v484_v22, %v390_v19  ;;  %v571_v47 = vmul.f32 %v484_v22, %v391_v20  ;;  %v499_v53 = vpop.permute.xlu0 %498  ;;  %v415_v3 = vld [vmem:[%s1648_s5 + $0x200] sm:$0xff]  ;;  %v416_v4 = vld [vmem:[%s1648_s5 + $0x208] sm:$0xff] }
 0x1d7   :  { %670 = vst [vmem:[%s1649_s6 + $0x108] sm:$0xff] %v564_v11  ;;  %671 = vst.msk [vmem:[%s1649_s6 + $0x110] sm:$0xff] %vm642_vm1, %v565_v12  ;;  %v572_v48 = vmul.f32 %v484_v22, %v392_v21  ;;  %v580_v54 = vmul.f32 %v494_v52, %v400_v32  ;;  %v581_v55 = vmul.f32 %v494_v52, %v401_v37  ;;  %v417_v5 = vld [vmem:[%s1648_s5 + $0x210] sm:$0xff]  ;;  %v426_v11 = vld [vmem:[%s1648_s5 + $0x258] sm:$0xff] }
 0x1d8   :  { %662 = vst [vmem:[%s1649_s6 + $0xc8] sm:$0xff] %v556_v13  ;;  %663 = vst [vmem:[%s1649_s6 + $0xd0] sm:$0xff] %v557_v17  ;;  %v582_v56 = vmul.f32 %v494_v52, %v402_v38  ;;  %v583_v57 = vmul.f32 %v494_v52, %v403_v39  ;;  %v587_v63 = vmul.f32 %v499_v53, %v407_v28  ;;  %v425_v10 = vld [vmem:[%s1648_s5 + $0x250] sm:$0xff]  ;;  %v427_v12 = vld [vmem:[%s1648_s5 + $0x260] sm:$0xff] }
 0x1d9   :  { %664 = vst.msk [vmem:[%s1649_s6 + $0xd8] sm:$0xff] %vm642_vm1, %v558_v18  ;;  %672 = vst [vmem:[%s1649_s6 + $0x118] sm:$0xff] %v566_v24  ;;  %v588_v0 = vmul.f32 %v499_v53, %v408_v29  ;;  %v589_v1 = vmul.f32 %v499_v53, %v409_v30  ;;  %v590_v2 = vmul.f32 %v499_v53, %v410_v31  ;;  %v418_v15 = vld [vmem:[%s1648_s5 + $0x218] sm:$0xff]  ;;  %v419_v16 = vld [vmem:[%s1648_s5 + $0x220] sm:$0xff]  ;;  %v504_v18 = vpop.permute.xlu1 %503 }
 0x1da   :  { %673 = vst [vmem:[%s1649_s6 + $0x120] sm:$0xff] %v567_v25  ;;  %674 = vst [vmem:[%s1649_s6 + $0x128] sm:$0xff] %v568_v26  ;;  %v591_v6 = vmul.f32 %v499_v53, %v411_v44  ;;  %v592_v7 = vmul.f32 %v499_v53, %v412_v45  ;;  %v593_v8 = vmul.f32 %v499_v53, %v413_v46  ;;  %v420_v17 = vld [vmem:[%s1648_s5 + $0x228] sm:$0xff]  ;;  %v509_v19 = vpop.permute.xlu0 %508  ;;  %v435_v24 = vld [vmem:[%s1648_s5 + $0x2a0] sm:$0xff] }
 0x1db   :  { %675 = vst [vmem:[%s1649_s6 + $0x130] sm:$0xff] %v569_v27  ;;  %679 = vst [vmem:[%s1649_s6 + $0x150] sm:$0xff] %v573_v33  ;;  %v584_v9 = vmul.f32 %v494_v52, %v404_v49  ;;  %v585_v13 = vmul.f32 %v494_v52, %v405_v50  ;;  %v586_v14 = vmul.f32 %v494_v52, %v406_v51  ;;  %v436_v25 = vld [vmem:[%s1648_s5 + $0x2a8] sm:$0xff]  ;;  %v437_v26 = vld [vmem:[%s1648_s5 + $0x2b0] sm:$0xff] }
 0x1dc   :  { %680 = vst [vmem:[%s1649_s6 + $0x158] sm:$0xff] %v574_v34  ;;  %681 = vst [vmem:[%s1649_s6 + $0x160] sm:$0xff] %v575_v35  ;;  %v594_v20 = vmul.f32 %v504_v18, %v414_v62  ;;  %v595_v21 = vmul.f32 %v504_v18, %v415_v3  ;;  %v596_v22 = vmul.f32 %v504_v18, %v416_v4  ;;  %v438_v27 = vld [vmem:[%s1648_s5 + $0x2b8] sm:$0xff]  ;;  %v428_v28 = vld [vmem:[%s1648_s5 + $0x268] sm:$0xff] }
 0x1dd   :  { %682 = vst [vmem:[%s1649_s6 + $0x168] sm:$0xff] %v576_v36  ;;  %683 = vst [vmem:[%s1649_s6 + $0x170] sm:$0xff] %v577_v40  ;;  %v597_v23 = vmul.f32 %v504_v18, %v417_v5  ;;  %v601_v29 = vmul.f32 %v509_v19, %v421_v58  ;;  %v602_v30 = vmul.f32 %v509_v19, %v422_v59  ;;  %v429_v33 = vld [vmem:[%s1648_s5 + $0x270] sm:$0xff]  ;;  %v430_v34 = vld [vmem:[%s1648_s5 + $0x278] sm:$0xff] }
 0x1de   :  { %684 = vst [vmem:[%s1649_s6 + $0x178] sm:$0xff] %v578_v41  ;;  %685 = vst.msk [vmem:[%s1649_s6 + $0x180] sm:$0xff] %vm642_vm1, %v579_v42  ;;  %v603_v31 = vmul.f32 %v509_v19, %v423_v60  ;;  %v604_v32 = vmul.f32 %v509_v19, %v424_v61  ;;  %v431_v35 = vld [vmem:[%s1648_s5 + $0x280] sm:$0xff]  ;;  %v605_v36 = vmul.f32 %v509_v19, %v425_v10  ;;  %v440_v41 = vld [vmem:[%s1648_s5 + $0x2c8] sm:$0xff]  ;;  %v519_v49 = vpop.permute.xlu0 %518 }
 0x1df   :  { %676 = vst [vmem:[%s1649_s6 + $0x138] sm:$0xff] %v570_v43  ;;  %677 = vst [vmem:[%s1649_s6 + $0x140] sm:$0xff] %v571_v47  ;;  %v606_v37 = vmul.f32 %v509_v19, %v426_v11  ;;  %v607_v38 = vmul.f32 %v509_v19, %v427_v12  ;;  %v598_v39 = vmul.f32 %v504_v18, %v418_v15  ;;  %v439_v40 = vld [vmem:[%s1648_s5 + $0x2c0] sm:$0xff]  ;;  %v441_v42 = vld [vmem:[%s1648_s5 + $0x2d0] sm:$0xff] }
 0x1e0   :  { %678 = vst.msk [vmem:[%s1649_s6 + $0x148] sm:$0xff] %vm642_vm1, %v572_v48  ;;  %686 = vst [vmem:[%s1649_s6 + $0x188] sm:$0xff] %v580_v54  ;;  %v599_v43 = vmul.f32 %v504_v18, %v419_v16  ;;  %v600_v44 = vmul.f32 %v504_v18, %v420_v17  ;;  %v432_v45 = vld [vmem:[%s1648_s5 + $0x288] sm:$0xff]  ;;  %v433_v46 = vld [vmem:[%s1648_s5 + $0x290] sm:$0xff]  ;;  %v514_v48 = vpop.permute.xlu1 %513  ;;  %v616_v58 = vmul.f32 %v519_v49, %v436_v25 }
 0x1e1   :  { %687 = vst [vmem:[%s1649_s6 + $0x190] sm:$0xff] %v581_v55  ;;  %688 = vst [vmem:[%s1649_s6 + $0x198] sm:$0xff] %v582_v56  ;;  %v434_v47 = vld [vmem:[%s1648_s5 + $0x298] sm:$0xff]  ;;  %v608_v50 = vmul.f32 %v514_v48, %v428_v28  ;;  %v609_v51 = vmul.f32 %v514_v48, %v429_v33  ;;  %v610_v52 = vmul.f32 %v514_v48, %v430_v34  ;;  %v449_v54 = vld [vmem:[%s1648_s5 + $0x310] sm:$0xff] }
 0x1e2   :  { %689 = vst [vmem:[%s1649_s6 + $0x1a0] sm:$0xff] %v583_v57  ;;  %693 = vst [vmem:[%s1649_s6 + $0x1c0] sm:$0xff] %v587_v63  ;;  %v611_v53 = vmul.f32 %v514_v48, %v431_v35  ;;  %v450_v55 = vld [vmem:[%s1648_s5 + $0x318] sm:$0xff]  ;;  %v615_v57 = vmul.f32 %v519_v49, %v435_v24  ;;  %v617_v59 = vmul.f32 %v519_v49, %v437_v26  ;;  %v443_v61 = vld [vmem:[%s1648_s5 + $0x2e0] sm:$0xff] }
 0x1e3   :  { %694 = vst [vmem:[%s1649_s6 + $0x1c8] sm:$0xff] %v588_v0  ;;  %695 = vst [vmem:[%s1649_s6 + $0x1d0] sm:$0xff] %v589_v1  ;;  %v442_v56 = vld [vmem:[%s1648_s5 + $0x2d8] sm:$0xff]  ;;  %v618_v60 = vmul.f32 %v519_v49, %v438_v27  ;;  %v444_v62 = vld [vmem:[%s1648_s5 + $0x2e8] sm:$0xff]  ;;  %v619_v0 = vmul.f32 %v519_v49, %v439_v40  ;;  %v620_v1 = vmul.f32 %v519_v49, %v440_v41 }
 0x1e4   :  { %696 = vst [vmem:[%s1649_s6 + $0x1d8] sm:$0xff] %v590_v2  ;;  %697 = vst [vmem:[%s1649_s6 + $0x1e0] sm:$0xff] %v591_v6  ;;  %v445_v63 = vld [vmem:[%s1648_s5 + $0x2f0] sm:$0xff]  ;;  %v621_v2 = vmul.f32 %v519_v49, %v441_v42  ;;  %v612_v3 = vmul.f32 %v514_v48, %v432_v45  ;;  %v451_v4 = vld [vmem:[%s1648_s5 + $0x320] sm:$0xff]  ;;  %v524_v12 = vpop.permute.xlu1 %523 }
 0x1e5   :  { %698 = vst [vmem:[%s1649_s6 + $0x1e8] sm:$0xff] %v592_v7  ;;  %699 = vst.msk [vmem:[%s1649_s6 + $0x1f0] sm:$0xff] %vm642_vm1, %v593_v8  ;;  %v452_v5 = vld [vmem:[%s1648_s5 + $0x328] sm:$0xff]  ;;  %v453_v6 = vld [vmem:[%s1648_s5 + $0x330] sm:$0xff]  ;;  %v613_v7 = vmul.f32 %v514_v48, %v433_v46  ;;  %v614_v8 = vmul.f32 %v514_v48, %v434_v47  ;;  %v622_v16 = vmul.f32 %v524_v12, %v442_v56 }
 0x1e6   :  { %690 = vst [vmem:[%s1649_s6 + $0x1a8] sm:$0xff] %v584_v9  ;;  %691 = vst [vmem:[%s1649_s6 + $0x1b0] sm:$0xff] %v585_v13  ;;  %v454_v9 = vld [vmem:[%s1648_s5 + $0x338] sm:$0xff]  ;;  %v455_v10 = vld [vmem:[%s1648_s5 + $0x340] sm:$0xff]  ;;  %v529_v13 = vpop.permute.xlu0 %528  ;;  %v623_v17 = vmul.f32 %v524_v12, %v443_v61  ;;  %v624_v18 = vmul.f32 %v524_v12, %v444_v62  ;;  %v625_v19 = vmul.f32 %v524_v12, %v445_v63 }
 0x1e7   :  { %692 = vst.msk [vmem:[%s1649_s6 + $0x1b8] sm:$0xff] %vm642_vm1, %v586_v14  ;;  %700 = vst [vmem:[%s1649_s6 + $0x1f8] sm:$0xff] %v594_v20  ;;  %v446_v11 = vld [vmem:[%s1648_s5 + $0x2f8] sm:$0xff]  ;;  %v447_v14 = vld [vmem:[%s1648_s5 + $0x300] sm:$0xff]  ;;  %v629_v20 = vmul.f32 %v529_v13, %v449_v54  ;;  %v633_v24 = vmul.f32 %v529_v13, %v453_v6  ;;  %v634_v25 = vmul.f32 %v529_v13, %v454_v9 }
 0x1e8   :  { %701 = vst [vmem:[%s1649_s6 + $0x200] sm:$0xff] %v595_v21  ;;  %702 = vst [vmem:[%s1649_s6 + $0x208] sm:$0xff] %v596_v22  ;;  %v448_v15 = vld [vmem:[%s1648_s5 + $0x308] sm:$0xff]  ;;  %v630_v21 = vmul.f32 %v529_v13, %v450_v55  ;;  %v631_v22 = vmul.f32 %v529_v13, %v451_v4  ;;  %v635_v26 = vmul.f32 %v529_v13, %v455_v10 }
 0x1e9   :  { %703 = vst [vmem:[%s1649_s6 + $0x210] sm:$0xff] %v597_v23  ;;  %707 = vst [vmem:[%s1649_s6 + $0x230] sm:$0xff] %v601_v29  ;;  %v632_v23 = vmul.f32 %v529_v13, %v452_v5  ;;  %v626_v27 = vmul.f32 %v524_v12, %v446_v11  ;;  %v627_v28 = vmul.f32 %v524_v12, %v447_v14 }
 0x1ea   :  { %708 = vst [vmem:[%s1649_s6 + $0x238] sm:$0xff] %v602_v30  ;;  %709 = vst [vmem:[%s1649_s6 + $0x240] sm:$0xff] %v603_v31  ;;  %v628_v29 = vmul.f32 %v524_v12, %v448_v15 }
 0x1eb   :  { %710 = vst [vmem:[%s1649_s6 + $0x248] sm:$0xff] %v604_v32  ;;  %711 = vst [vmem:[%s1649_s6 + $0x250] sm:$0xff] %v605_v36 }
 0x1ec   :  { %712 = vst [vmem:[%s1649_s6 + $0x258] sm:$0xff] %v606_v37  ;;  %713 = vst.msk [vmem:[%s1649_s6 + $0x260] sm:$0xff] %vm642_vm1, %v607_v38 }
 0x1ed   :  { %704 = vst [vmem:[%s1649_s6 + $0x218] sm:$0xff] %v598_v39  ;;  %705 = vst [vmem:[%s1649_s6 + $0x220] sm:$0xff] %v599_v43 }
 0x1ee   :  { %706 = vst.msk [vmem:[%s1649_s6 + $0x228] sm:$0xff] %vm642_vm1, %v600_v44  ;;  %714 = vst [vmem:[%s1649_s6 + $0x268] sm:$0xff] %v608_v50 }
 0x1ef   :  { %715 = vst [vmem:[%s1649_s6 + $0x270] sm:$0xff] %v609_v51  ;;  %716 = vst [vmem:[%s1649_s6 + $0x278] sm:$0xff] %v610_v52 }
 0x1f0   :  { %717 = vst [vmem:[%s1649_s6 + $0x280] sm:$0xff] %v611_v53  ;;  %721 = vst [vmem:[%s1649_s6 + $0x2a0] sm:$0xff] %v615_v57 }
 0x1f1   :  { %722 = vst [vmem:[%s1649_s6 + $0x2a8] sm:$0xff] %v616_v58  ;;  %723 = vst [vmem:[%s1649_s6 + $0x2b0] sm:$0xff] %v617_v59 }
 0x1f2   :  { %724 = vst [vmem:[%s1649_s6 + $0x2b8] sm:$0xff] %v618_v60  ;;  %725 = vst [vmem:[%s1649_s6 + $0x2c0] sm:$0xff] %v619_v0 }
 0x1f3   :  { %726 = vst [vmem:[%s1649_s6 + $0x2c8] sm:$0xff] %v620_v1  ;;  %727 = vst.msk [vmem:[%s1649_s6 + $0x2d0] sm:$0xff] %vm642_vm1, %v621_v2 }
 0x1f4   :  { %718 = vst [vmem:[%s1649_s6 + $0x288] sm:$0xff] %v612_v3  ;;  %719 = vst [vmem:[%s1649_s6 + $0x290] sm:$0xff] %v613_v7 }
 0x1f5   :  { %720 = vst.msk [vmem:[%s1649_s6 + $0x298] sm:$0xff] %vm642_vm1, %v614_v8  ;;  %728 = vst [vmem:[%s1649_s6 + $0x2d8] sm:$0xff] %v622_v16 }
 0x1f6   :  { %729 = vst [vmem:[%s1649_s6 + $0x2e0] sm:$0xff] %v623_v17  ;;  %730 = vst [vmem:[%s1649_s6 + $0x2e8] sm:$0xff] %v624_v18 }
 0x1f7   :  { %731 = vst [vmem:[%s1649_s6 + $0x2f0] sm:$0xff] %v625_v19  ;;  %735 = vst [vmem:[%s1649_s6 + $0x310] sm:$0xff] %v629_v20 }
 0x1f8   :  { %736 = vst [vmem:[%s1649_s6 + $0x318] sm:$0xff] %v630_v21  ;;  %737 = vst [vmem:[%s1649_s6 + $0x320] sm:$0xff] %v631_v22 }
 0x1f9   :  { %738 = vst [vmem:[%s1649_s6 + $0x328] sm:$0xff] %v632_v23  ;;  %739 = vst [vmem:[%s1649_s6 + $0x330] sm:$0xff] %v633_v24 }
 0x1fa   :  { %740 = vst [vmem:[%s1649_s6 + $0x338] sm:$0xff] %v634_v25  ;;  %741 = vst.msk [vmem:[%s1649_s6 + $0x340] sm:$0xff] %vm642_vm1, %v635_v26 }
 0x1fb   :  { %732 = vst [vmem:[%s1649_s6 + $0x2f8] sm:$0xff] %v626_v27  ;;  %733 = vst [vmem:[%s1649_s6 + $0x300] sm:$0xff] %v627_v28 }
 0x1fc   :  { %734 = vst.msk [vmem:[%s1649_s6 + $0x308] sm:$0xff] %vm642_vm1, %v628_v29 }

</bundles_post_ra>
